<compile_context>
chip_gen: v7x
topology: tpu7x:2x2x1
jax: 0.10.0
libtpu: 0.0.40
codegen_flags: <defaults>
</compile_context>

<pallas_src>
import jax
import jax.numpy as jnp
from jax.experimental import pallas as pl
from jax.experimental.pallas import tpu as pltpu

_LANE = 128
# 8192 rows * 128 lanes * 4 B = 4 MiB per input block -> 16 MiB double-buffered
# working set (2 inputs x 2 buffers), safe within v7x's scoped VMEM default.
_MAX_TILE_ROWS = 8192


def _focal_partial_kernel(pred_ref, gt_ref, part_ref):
    """Per-tile partials: row 0 = sum of loss terms, row 1 = #positives.

    Partials stay lane-resident ([1, 128] per quantity, sublane-reduced only);
    the cheap final 128-lane reduction happens once in the wrapper.
    """
    pred = pred_ref[...].astype(jnp.float32)     # [tile_rows, 128]
    gt = gt_ref[...].astype(jnp.float32)         # [tile_rows, 128]

    pos = gt == 1.0
    neg = gt < 1.0

    one_m_pred = 1.0 - pred
    one_m_gt = 1.0 - gt
    nw2 = one_m_gt * one_m_gt
    neg_w = nw2 * nw2                            # (1 - gt)^4

    # pos/neg are mutually exclusive -> compute a single log per element.
    logv = jnp.log(jnp.where(pos, pred, one_m_pred))
    weight = jnp.where(pos, one_m_pred * one_m_pred,
                       jnp.where(neg, pred * pred * neg_w, 0.0))
    term = logv * weight
    posf = pos.astype(jnp.float32)

    part_ref[0, 0:1, :] = jnp.sum(term, axis=0, keepdims=True)   # [1, 128]
    part_ref[0, 1:2, :] = jnp.sum(posf, axis=0, keepdims=True)   # [1, 128]


def _neg_loss_terms(pred, gt):
    """Same math as the kernel, plain jnp (used for the small ragged tail)."""
    pred = pred.astype(jnp.float32)
    gt = gt.astype(jnp.float32)
    pos = gt == 1.0
    neg = gt < 1.0
    one_m_pred = 1.0 - pred
    neg_w = jnp.square(jnp.square(1.0 - gt))
    logv = jnp.log(jnp.where(pos, pred, one_m_pred))
    weight = jnp.where(pos, one_m_pred * one_m_pred,
                       jnp.where(neg, pred * pred * neg_w, 0.0))
    return jnp.sum(logv * weight), jnp.sum(pos.astype(jnp.float32))


def focal_loss(pred, gt, *, tile_rows=4096):
    """CornerNet modified focal loss; matches FocalLoss.forward(out, target).

    Inputs may be f32 or bf16 (bf16 halves HBM traffic on v5e/v6e; compute is
    always f32 inside the kernel).
    """
    assert pred.shape == gt.shape
    total = int(pred.size)

    pred_flat = pred.reshape(-1)
    gt_flat = gt.reshape(-1)

    # Block sublane constraint: tile_rows must be a multiple of 8, >= 8.
    tile_rows = max(8, min(int(tile_rows), _MAX_TILE_ROWS)) // 8 * 8

    full_rows = total // _LANE
    if full_rows >= 16:
        # Prefer >= 2 tiles so the "parallel" grid axis can actually shard
        # across the two v7x TensorCores.
        tile_rows = min(tile_rows, (full_rows // 2) // 8 * 8)
        num_tiles = full_rows // tile_rows
    elif full_rows >= 8:
        tile_rows = 8
        num_tiles = 1
    else:
        num_tiles = 0

    loss_sum = jnp.float32(0.0)
    num_pos = jnp.float32(0.0)
    main_elems = 0

    if num_tiles > 0:
        main_rows = num_tiles * tile_rows
        main_elems = main_rows * _LANE
        if total % _LANE == 0:
            # Zero-copy lane-dense view of the whole array; the grid simply
            # never visits leftover rows (those go through the jnp tail).
            pred2 = pred_flat.reshape(full_rows, _LANE)
            gt2 = gt_flat.reshape(full_rows, _LANE)
        else:
            # Rare (size not a multiple of 128): one prefix-slice copy of the
            # main region is the unavoidable cost of the 2-D view.
            pred2 = pred_flat[:main_elems].reshape(main_rows, _LANE)
            gt2 = gt_flat[:main_elems].reshape(main_rows, _LANE)

        in_bytes = main_elems * (pred2.dtype.itemsize + gt2.dtype.itemsize)
        cost = pl.CostEstimate(
            flops=13 * main_elems,
            transcendentals=main_elems,
            bytes_accessed=in_bytes + num_tiles * 2 * _LANE * 4)

        partials = pl.pallas_call(
            _focal_partial_kernel,
            out_shape=jax.ShapeDtypeStruct((num_tiles, 2, _LANE), jnp.float32),
            grid=(num_tiles,),
            in_specs=[
                pl.BlockSpec((tile_rows, _LANE), lambda i: (i, 0)),
                pl.BlockSpec((tile_rows, _LANE), lambda i: (i, 0)),
            ],
            out_specs=pl.BlockSpec((1, 2, _LANE), lambda i: (i, 0, 0)),
            compiler_params=pltpu.CompilerParams(
                dimension_semantics=("parallel",)),
            cost_estimate=cost,
        )(pred2, gt2)

        loss_sum = jnp.sum(partials[:, 0, :])
        num_pos = jnp.sum(partials[:, 1, :])

    if main_elems < total:
        # Small ragged tail (< tile_rows*128 + 128 elements): plain jnp, fused
        # by XLA; avoids full-array jnp.pad and per-tile masking in the kernel.
        t_loss, t_cnt = _neg_loss_terms(pred_flat[main_elems:],
                                        gt_flat[main_elems:])
        loss_sum = loss_sum + t_loss
        num_pos = num_pos + t_cnt

    # When num_pos == 0 the positive contribution is identically 0, so this
    # single formula covers both branches of the PyTorch reference.
    return -loss_sum / jnp.maximum(num_pos, 1.0)


def _reference(pred, gt):
    """Pure-JAX reference mirroring the PyTorch _neg_loss semantics."""
    pos_inds = (gt == 1.0).astype(jnp.float32)
    neg_inds = (gt < 1.0).astype(jnp.float32)
    neg_weights = jnp.power(1.0 - gt, 4)
    pos_loss = jnp.log(pred) * jnp.power(1.0 - pred, 2) * pos_inds
    neg_loss = jnp.log(1.0 - pred) * jnp.power(pred, 2) * neg_weights * neg_inds
    num_pos = pos_inds.sum()
    pos_loss = pos_loss.sum()
    neg_loss = neg_loss.sum()
    return jnp.where(num_pos == 0.0, -neg_loss,
                     -(pos_loss + neg_loss) / jnp.maximum(num_pos, 1.0))


if __name__ == "__main__":
    key = jax.random.PRNGKey(0)
    k1, k2, k3, k4, k5, k6, k7, k8 = jax.random.split(key, 8)

    # 1) Heatmap-shaped demo: batch=2, classes=4, 16x16 spatial (2 kernel tiles).
    B, C, H, W = 2, 4, 16, 16
    pred = jnp.clip(
        jax.nn.sigmoid(jax.random.normal(k1, (B, C, H, W), jnp.float32)),
        1e-4, 1.0 - 1e-4)
    gt = jax.random.uniform(k2, (B, C, H, W), jnp.float32) * 0.98
    peaks = jax.random.uniform(k3, (B, C, H, W)) > 0.95
    gt = jnp.where(peaks, 1.0, gt)          # some exact-1 "center" pixels

    loss = focal_loss(pred, gt)
    jax.block_until_ready(loss)
    ref = _reference(pred, gt)
    assert loss.shape == ()
    assert jnp.allclose(loss, ref, rtol=1e-5, atol=1e-5), (loss, ref)

    # 2) Ragged shape: exercises the jnp tail path and the num_pos == 0 branch.
    pred_r = jnp.clip(
        jax.nn.sigmoid(jax.random.normal(k4, (1, 3, 7, 9), jnp.float32)),
        1e-4, 1.0 - 1e-4)
    gt_r = jax.random.uniform(k5, (1, 3, 7, 9), jnp.float32) * 0.9
    loss_r = focal_loss(pred_r, gt_r)
    jax.block_until_ready(loss_r)
    ref_r = _reference(pred_r, gt_r)
    assert jnp.allclose(loss_r, ref_r, rtol=1e-5, atol=1e-5), (loss_r, ref_r)

    # 3) Kernel tiles + leftover rows through the jnp tail (40 rows, tile=16).
    pred_m = jnp.clip(
        jax.nn.sigmoid(jax.random.normal(k6, (2, 4, 20, 32), jnp.float32)),
        1e-4, 1.0 - 1e-4)
    gt_m = jax.random.uniform(k7, (2, 4, 20, 32), jnp.float32) * 0.98
    peaks_m = jax.random.uniform(k8, (2, 4, 20, 32)) > 0.97
    gt_m = jnp.where(peaks_m, 1.0, gt_m)
    loss_m = focal_loss(pred_m, gt_m)
    jax.block_until_ready(loss_m)
    ref_m = _reference(pred_m, gt_m)
    assert jnp.allclose(loss_m, ref_m, rtol=1e-5, atol=1e-5), (loss_m, ref_m)

    print("KERNEL_OK")
</pallas_src>

<mosaic_0001>
module attributes {stable_mosaic.version = 11 : i64} {
  func.func @_focal_partial_kernel(%arg0: i32, %arg1: memref<8x128xf32, #tpu.memory_space<vmem>>, %arg2: memref<8x128xf32, #tpu.memory_space<vmem>>, %arg3: memref<1x2x128xf32, #tpu.memory_space<vmem>>) attributes {dimension_semantics = [#tpu.dimension_semantics<parallel>], iteration_bounds = array<i64: 2>, scalar_prefetch = 0 : i64, scratch_operands = 0 : i64, tpu.core_type = #tpu.core_type<tc>, window_params = [{transform_indices = @transform_0, window_bounds = array<i64: 8, 128>}, {transform_indices = @transform_1, window_bounds = array<i64: 8, 128>}, {transform_indices = @transform_2, window_bounds = array<i64: 1, 2, 128>}]} {
    %c0 = arith.constant 0 : index
    %c0_0 = arith.constant 0 : index
    %0 = vector.load %arg1[%c0, %c0_0] : memref<8x128xf32, #tpu.memory_space<vmem>>, vector<8x128xf32>
    %c0_1 = arith.constant 0 : index
    %c0_2 = arith.constant 0 : index
    %1 = vector.load %arg2[%c0_1, %c0_2] : memref<8x128xf32, #tpu.memory_space<vmem>>, vector<8x128xf32>
    %cst = arith.constant 1.000000e+00 : f32
    %2 = vector.broadcast %cst : f32 to vector<8x128xf32>
    %3 = arith.cmpf oeq, %1, %2 : vector<8x128xf32>
    %cst_3 = arith.constant 1.000000e+00 : f32
    %4 = vector.broadcast %cst_3 : f32 to vector<8x128xf32>
    %5 = arith.cmpf olt, %1, %4 : vector<8x128xf32>
    %cst_4 = arith.constant 1.000000e+00 : f32
    %6 = vector.broadcast %cst_4 : f32 to vector<8x128xf32>
    %7 = arith.subf %6, %0 : vector<8x128xf32>
    %cst_5 = arith.constant 1.000000e+00 : f32
    %8 = vector.broadcast %cst_5 : f32 to vector<8x128xf32>
    %9 = arith.subf %8, %1 : vector<8x128xf32>
    %10 = arith.mulf %9, %9 : vector<8x128xf32>
    %11 = arith.mulf %10, %10 : vector<8x128xf32>
    %12 = arith.select %3, %0, %7 : vector<8x128xi1>, vector<8x128xf32>
    %13 = math.log %12 : vector<8x128xf32>
    %14 = arith.mulf %7, %7 : vector<8x128xf32>
    %15 = arith.mulf %0, %0 : vector<8x128xf32>
    %16 = arith.mulf %15, %11 : vector<8x128xf32>
    %cst_6 = arith.constant 0.000000e+00 : f32
    %17 = vector.broadcast %cst_6 : f32 to vector<8x128xf32>
    %18 = arith.select %5, %16, %17 : vector<8x128xi1>, vector<8x128xf32>
    %19 = arith.select %3, %14, %18 : vector<8x128xi1>, vector<8x128xf32>
    %20 = arith.mulf %13, %19 : vector<8x128xf32>
    %21 = arith.extui %3 : vector<8x128xi1> to vector<8x128xi32>
    %22 = arith.sitofp %21 : vector<8x128xi32> to vector<8x128xf32>
    %cst_7 = arith.constant dense<0.000000e+00> : vector<128xf32>
    %23 = vector.multi_reduction <add>, %20, %cst_7 [0] : vector<8x128xf32> to vector<128xf32>
    %24 = vector.shape_cast %23 : vector<128xf32> to vector<1x128xf32>
    %c0_8 = arith.constant 0 : index
    %c0_9 = arith.constant 0 : index
    %c0_10 = arith.constant 0 : index
    %25 = vector.load %arg3[%c0_8, %c0_9, %c0_10] : memref<1x2x128xf32, #tpu.memory_space<vmem>>, vector<1x1x128xf32>
    %26 = vector.shape_cast %25 : vector<1x1x128xf32> to vector<1x128xf32>
    %27 = vector.shape_cast %24 : vector<1x128xf32> to vector<1x1x128xf32>
    tpu.vector_store %arg3[%c0_8, %c0_9, %c0_10], %27 {strides = array<i32>} : memref<1x2x128xf32, #tpu.memory_space<vmem>>, vector<1x1x128xf32>,
    %cst_11 = arith.constant dense<0.000000e+00> : vector<128xf32>
    %28 = vector.multi_reduction <add>, %22, %cst_11 [0] : vector<8x128xf32> to vector<128xf32>
    %29 = vector.shape_cast %28 : vector<128xf32> to vector<1x128xf32>
    %c0_12 = arith.constant 0 : index
    %c1 = arith.constant 1 : index
    %c0_13 = arith.constant 0 : index
    %30 = vector.load %arg3[%c0_12, %c1, %c0_13] : memref<1x2x128xf32, #tpu.memory_space<vmem>>, vector<1x1x128xf32>
    %31 = vector.shape_cast %30 : vector<1x1x128xf32> to vector<1x128xf32>
    %32 = vector.shape_cast %29 : vector<1x128xf32> to vector<1x1x128xf32>
    tpu.vector_store %arg3[%c0_12, %c1, %c0_13], %32 {strides = array<i32>} : memref<1x2x128xf32, #tpu.memory_space<vmem>>, vector<1x1x128xf32>,
    return
  }
  func.func @transform_0(%arg0: i32) -> (i32, i32) {
    %c0_i32 = arith.constant 0 : i32
    %c0_i32_0 = arith.constant 0 : i32
    return %arg0, %c0_i32 : i32, i32
  }
  func.func @transform_1(%arg0: i32) -> (i32, i32) {
    %c0_i32 = arith.constant 0 : i32
    %c0_i32_0 = arith.constant 0 : i32
    return %arg0, %c0_i32 : i32, i32
  }
  func.func @transform_2(%arg0: i32) -> (i32, i32, i32) {
    %c0_i32 = arith.constant 0 : i32
    %c0_i32_0 = arith.constant 0 : i32
    %c0_i32_1 = arith.constant 0 : i32
    return %arg0, %c0_i32, %c0_i32_0 : i32, i32, i32
  }
}

</mosaic_0001>

<bundles_post_ra>
// kernel: tpu_custom_call.1
= control target key start
LH: loop header
LB: loop body
LE: loop exit
PB: predicated region body
PF: predicated region fallthrough
CT: control target
= control target key end

     0   :  { %7 = vsyncpa [#allocation3], 0  ;;  %s770_s0 = inlined_call_operand.hbm [shape: f32[16,128], index: 0, kind: input, shape index: {}]   ;;  %s771_s1 = inlined_call_operand.hbm [shape: f32[16,128], index: 1, kind: input, shape index: {}]   ;;  %s772_s2 = inlined_call_operand.hbm [shape: f32[2,2,128], index: 2, kind: output, shape index: {}]  }
   0x1   :  { %9 = vsyncpa [#allocation3 + $0x1], 0 }
   0x2   :  { %10 = vsyncpa [#allocation6], 0 }
   0x3   :  { %12 = vsyncpa [#allocation6 + $0x1], 0 }
   0x4   :  { %13 = vsyncpa [#allocation4], 0 }
   0x5   :  { %15 = vsyncpa [#allocation4 + $0x1], 0  ;;  %s557_s9 = smov 0   ;;  %s559_s10 = smov 0  }
   0x6   :  { %s561_s11 = smov 0   ;;  %s563_s12 = smov 0  }
   0x7 LB: > { %s578_s13 = sadd.s32 4294967295, %s536_s12   ;;  %s336_s14 = sadd.s32 4294967294, %s536_s12   ;;  %s536_s12 = sphi %s563_s12, %s791_s12   ;;  %s532_s11 = sphi %s561_s11, %s790_s11   ;;  %s528_s10 = sphi %s559_s10, %s789_s10   ;;  %s524_s9 = sphi %s557_s9, %s788_s9  }
   0x8   : > { %s582_s15 = sadd.s32 1, %s536_s12   ;;  %s28_s16 = sadd.s32 1, %s532_s11 }
   0x9   : > { %s25_s17 = ssub.s32 %s536_s12, %s582_s15  ;;  %p35_p0 = scmp.ne.s32.totalorder %s532_s11, %s528_s10 }
   0xa   : > { %p26_p1 = scmp.eq.s32.totalorder %s25_s17, 0  ;;  %p36_p2 = scmp.eq.s32.totalorder %s536_s12, 0 }
   0xb   : > { %p41_p3 = scmp.ne.s32.totalorder %s528_s10, %s524_s9  ;;  %p42_p4 = scmp.eq.s32.totalorder %s578_s13, 0 }
   0xc   : > { %s594_s18 = scalar_select %p26_p1, %s532_s11, %s28_s16  }
   0xd   : > { %p596_p5 = por %p36_p2, %p35_p0  ;;  %p600_p6 = por %p42_p4, %p41_p3 }
   0xe   : > { %p91_p7 = scmp.eq.s32.totalorder %s578_s13, 1  ;;  %p97_p8 = scmp.eq.s32.totalorder %s336_s14, 1 }
   0xf   : > { %s776_s20 = scalar_select %p600_p6, 1, 0 }
  0x10   : > { %p369_p10 = scmp.lt.s32.totalorder %s536_s12, 2  ;;  %p607_p11 = por %p91_p7, %p35_p0 }
  0x11   : > { %p611_p12 = por %p97_p8, %p41_p3  ;;  %s616_s23 = sand.u32 1, %s532_s11  }
  0x12   : > { %s777_s21 = scalar_select %p607_p11, 1, 0 }
  0x13   : > { %s778_s22 = scalar_select %p611_p12, 1, 0 }
  0x14   : > { %s340_s24 = sshll.u32 %s536_s12, 7  ;;  %s339_s25 = sshll.u32 %s616_s23, 3 }
  0x15   : > { %s625_s28 = scalar_lea.hbm %s770_s0, %s340_s24  ;;  %s121_s29 = scalar_lea.vmem [#allocation2], %s339_s25 }
  0x16   : > { %s128_s30 = sshll.u32 %s121_s29, 4  ;;  %p631_p13 = pnand %p369_p10, %p596_p5  ;;  %s635_s30 = int_to_ptr.vmem [resolvable:$true] %s128_s30 }
  0x17   : > { %s118_s4 = scalar_lea.sflag [#allocation3], %s616_s23  ;;  %s406_s5 = scalar_lea.hbm %s625_s28, 128 }
  0x18   : > { %p407_p2 = scmp.ne.s32.totalorder %s625_s28, %s406_s5  ;;  %p408_p3 = pneg %p631_p13 }
  0x19   : > { %s411_s8 = scalar_lea.hbm %s770_s0, 256  ;;  %p412_p5 = scmp.lt.u32.totalorder %s625_s28, %s770_s0 }
  0x1a   : > { %p409_p4 = pnand %p408_p3, %p407_p2  ;;  %p413_p8 = scmp.lt.u32.totalorder %s411_s8, %s406_s5 }
  0x1b   : > { %p415_p9 = scmp.lt.u32.totalorder %s406_s5, %s625_s28 }
  0x1c   : > { %p410_p7 = pneg %p409_p4  ;;  %p414_p10 = por %p413_p8, %p412_p5 }
  0x1e   : > { %p416_p0 = por %p415_p9, %p414_p10 }
  0x20   : > { %p417_p1 = pnand %p416_p0, %p410_p7 }
  0x22   : > { %420 = shalt.err (!%p417_p1)
}
  0x23   : > { %s421_s17 = scalar_lea.vmem %s635_s30, 128  ;;  %s538_s19 = smov [#allocation2]  }
  0x24   : > { %p422_p2 = scmp.ne.s32.totalorder %s635_s30, %s421_s17  ;;  %s426_s26 = sshll.u32 %s538_s19, 4  ;;  %s427_s26 = int_to_ptr.vmem [resolvable:$false] %s426_s26 }
  0x25   : > { %s428_s27 = scalar_lea.vmem %s427_s26, 256  ;;  %p429_p11 = scmp.lt.s32.totalorder %s635_s30, %s427_s26 }
  0x26   : > { %p424_p4 = pnand %p422_p2, %p408_p3  ;;  %p430_p5 = scmp.lt.s32.totalorder %s428_s27, %s421_s17 }
  0x28   : > { %p425_p12 = pneg %p424_p4  ;;  %p431_p8 = por %p430_p5, %p429_p11 }
  0x2a   : > { %p432_p9 = pnand %p431_p8, %p425_p12 }
  0x2c   : > { %435 = shalt.err (!%p432_p9)
}
  0x2d   : > { %361 = dma.hbm_to_vmem [thread:$0]  (!%p631_p13), %s625_s28, 128, %s635_s30, %s118_s4  }
  0x2e   : > { %p780_p0 = scmp.lt.s32.totalorder %s536_s12, 3  ;;  %p781_p1 = scmp.ge.s32.totalorder %s536_s12, 1 }
  0x2f   : > { %s678_s7 = scalar_lea.hbm %s771_s1, %s340_s24  ;;  %s139_s8 = scalar_lea.vmem [#allocation5], %s339_s25 }
  0x30   : > { %p669_p7 = pnand %p781_p1, %p780_p0  ;;  %s146_s14 = sshll.u32 %s139_s8, 4  ;;  %s147_s14 = int_to_ptr.vmem [resolvable:$true] %s146_s14 }
  0x31   : > { %s136_s28 = scalar_lea.sflag [#allocation6], %s616_s23  ;;  %s436_s30 = scalar_lea.hbm %s678_s7, 128 }
  0x32   : > { %s782_s29 = scalar_select %p669_p7, 1, 0 }
  0x33   : > { %p437_p11 = scmp.ne.s32.totalorder %s678_s7, %s436_s30  ;;  %s441_s24 = scalar_lea.hbm %s771_s1, 256 }
  0x34   : > { %p442_p2 = scmp.lt.u32.totalorder %s678_s7, %s771_s1  ;;  %p443_p4 = scmp.lt.u32.totalorder %s441_s24, %s436_s30 }
  0x35   : > { %p439_p12 = pnand %p437_p11, %p408_p3  ;;  %p445_p8 = scmp.lt.u32.totalorder %s436_s30, %s678_s7 }
  0x36   : > { %p444_p5 = por %p443_p4, %p442_p2 }
  0x37   : > { %p440_p10 = pneg %p439_p12 }
  0x38   : > { %p446_p9 = por %p445_p8, %p444_p5 }
  0x3a   : > { %p447_p0 = pnand %p446_p9, %p440_p10 }
  0x3c   : > { %450 = shalt.err (!%p447_p0)
}
  0x3d   : > { %s451_s23 = scalar_lea.vmem %s147_s14, 128  ;;  %s539_s25 = smov [#allocation5]  }
  0x3e   : > { %p452_p1 = scmp.ne.s32.totalorder %s147_s14, %s451_s23  ;;  %s456_s26 = sshll.u32 %s539_s25, 4  ;;  %s457_s26 = int_to_ptr.vmem [resolvable:$false] %s456_s26 }
  0x3f   : > { %s458_s27 = scalar_lea.vmem %s457_s26, 256  ;;  %p459_p6 = scmp.lt.s32.totalorder %s147_s14, %s457_s26 }
  0x40   : > { %p454_p11 = pnand %p452_p1, %p408_p3  ;;  %p460_p7 = scmp.lt.s32.totalorder %s458_s27, %s451_s23 }
  0x42   : > { %p455_p12 = pneg %p454_p11  ;;  %p461_p2 = por %p460_p7, %p459_p6 }
  0x44   : > { %p462_p4 = pnand %p461_p2, %p455_p12 }
  0x46   : > { %465 = shalt.err (!%p462_p4)
}
  0x47   : > { %364 = dma.hbm_to_vmem [thread:$0]  (!%p631_p13), %s678_s7, 128, %s147_s14, %s136_s28  }
  0x48   : > { %p783_p10 = scmp.ne.s32.totalorder %s782_s29, 0 }
  0x49   : > { %s705_s5 = sand.u32 (!%p783_p10), 1, %s528_s10   ;;  %p784_p3 = scmp.ne.s32.totalorder (!%p783_p10), %s776_s20, 0 }
  0x4a   : > { %155 = sbr.rel (%p783_p10) target bundleno = 129 (0x81), region = 28  ;;  %s344_s6 = sshll.u32 (!%p783_p10), %s705_s5, 3 }
  0x4b   : > { %s158_s8 = scalar_lea.sflag (!%p783_p10), [#allocation3], %s705_s5  ;;  %s161_s30 = scalar_lea.vmem (!%p783_p10), [#allocation2], %s344_s6 }
  0x51   : > { %511 = dma.done.wait (%p784_p3), %s158_s8, 128  }
  0x52   : > { %513 = vsyncadd (%p784_p3), %s158_s8, 4294967168  ;;  %s167_s3 = scalar_lea.sflag [#allocation6], %s705_s5  ;;  %s170_s7 = scalar_lea.vmem [#allocation5], %s344_s6 }
  0x53   : > { %515 = dma.done.wait (%p784_p3), %s167_s3, 128  }
  0x54   : > { %517 = vsyncadd (%p784_p3), %s167_s3, 4294967168  ;;  %v196_v0 = vld [vmem:[%s161_s30] sm:$0xff]  ;;  %v197_v1 = vld [vmem:[%s170_s7] sm:$0xff]  ;;  %v540_v4 = vmov 0.0   ;;  %s346_s20 = sshll.u32 %s705_s5, 1  ;;  %s349_s28 = sshll.u32 %s578_s13, 5 }
  0x55   : > { %vm198_vm0 = vcmp.eq.f32.partialorder %v197_v1, 1.0  ;;  %v200_v2 = vsub.f32 1.0, %v196_v0  ;;  %v201_v3 = vsub.f32 1.0, %v197_v1  ;;  %v208_v8 = vmul.f32 %v196_v0, %v196_v0  ;;  %s195_s29 = scalar_lea.vmem [#allocation7], %s346_s20  ;;  %s728_s24 = scalar_lea.hbm %s772_s2, %s349_s28 }
  0x56   : > { %v347_v5 = vsel %vm198_vm0, 1.0, %v540_v4  ;;  %vm199_vm1 = vcmp.lt.f32.partialorder %v197_v1, 1.0  ;;  %s243_s14 = sshll.u32 %s195_s29, 4  ;;  %s230_s17 = scalar_lea.sflag [#allocation4], %s705_s5  ;;  %s723_s14 = int_to_ptr.vmem [resolvable:$true] %s243_s14 }
  0x57   : > { %v202_v6 = vmul.f32 %v201_v3, %v201_v3  ;;  %v204_v7 = vsel %vm198_vm0, %v196_v0, %v200_v2  ;;  %v222_v9 = vrot.slane %v347_v5, 4  ;;  %v207_v15 = vmul.f32 %v200_v2, %v200_v2  ;;  %s466_s19 = scalar_lea.vmem %s723_s14, 32  ;;  %p785_p13 = scmp.ne.s32.totalorder %s777_s21, 0 }
  0x58   : > { %404 = vlog2.f32 %v204_v7  ;;  %p467_p6 = scmp.ne.s32.totalorder %s723_s14, %s466_s19  ;;  %s541_s13 = smov [#allocation7]  }
  0x59   : > { %v203_v10 = vmul.f32 %v202_v6, %v202_v6  ;;  %v223_v11 = vadd.f32 %v347_v5, %v222_v9  ;;  %s470_s23 = sshll.u32 %s541_s13, 4  ;;  %s471_s23 = int_to_ptr.vmem [resolvable:$false] %s470_s23 }
  0x5a   : > { %p468_p7 = pnand %p467_p6, %p785_p13  ;;  %s472_s25 = scalar_lea.vmem %s471_s23, 64 }
  0x5b   : > { %v209_v12 = vmul.f32 %v208_v8, %v203_v10  ;;  %v224_v13 = vrot.slane %v223_v11, 2  ;;  %p473_p8 = scmp.lt.s32.totalorder %s723_s14, %s471_s23  ;;  %p474_p9 = scmp.lt.s32.totalorder %s472_s25, %s466_s19 }
  0x5c   : > { %p469_p5 = pneg %p468_p7 }
  0x5d   : > { %v225_v14 = vadd.f32 %v224_v13, %v223_v11  ;;  %v210_v16 = vsel %vm199_vm1, %v209_v12, 0.0  ;;  %p475_p0 = por %p474_p9, %p473_p8 }
  0x5e   : > { %v211_v20 = vsel %vm198_vm0, %v207_v15, %v210_v16 }
  0x5f   : > { %v226_v17 = vrot.slane %v225_v14, 1  ;;  %p476_p1 = pnand %p475_p0, %p469_p5 }
  0x61   : > { %v227_v18 = vadd.f32 %v226_v17, %v225_v14 }
  0x62   : > { %v405_v19 = vpop.eup %404 }
  0x63   : > { %v206_v21 = vmul.f32 0.6931472, %v405_v19  ;;  %228 = vst [vmem:[%s195_s29 + $0x1] sm:$0x1] %v227_v18 }
  0x65   : > { %v212_v22 = vmul.f32 %v211_v20, %v206_v21 }
  0x67   : > { %v215_v23 = vrot.slane %v212_v22, 4 }
  0x69   : > { %v216_v24 = vadd.f32 %v215_v23, %v212_v22 }
  0x6b   : > { %v217_v25 = vrot.slane %v216_v24, 2 }
  0x6d   : > { %v218_v26 = vadd.f32 %v217_v25, %v216_v24 }
  0x6f   : > { %v219_v27 = vrot.slane %v218_v26, 1 }
  0x71   : > { %v220_v28 = vadd.f32 %v219_v27, %v218_v26 }
  0x73   : > { %221 = vst [vmem:[%s195_s29] sm:$0x1] %v220_v28 }
  0x74   : > { %479 = shalt.err (!%p476_p1)
}
  0x75   : > { %s480_s26 = scalar_lea.hbm %s728_s24, 32  ;;  %s484_s6 = scalar_lea.hbm %s772_s2, 64 }
  0x76   : > { %p481_p11 = scmp.ne.s32.totalorder %s728_s24, %s480_s26  ;;  %p485_p4 = scmp.lt.u32.totalorder %s728_s24, %s772_s2 }
  0x77   : > { %p486_p10 = scmp.lt.u32.totalorder %s484_s6, %s480_s26  ;;  %p488_p6 = scmp.lt.u32.totalorder %s480_s26, %s728_s24 }
  0x78   : > { %p482_p12 = pnand %p481_p11, %p785_p13 }
  0x79   : > { %p487_p3 = por %p486_p10, %p485_p4 }
  0x7a   : > { %p483_p2 = pneg %p482_p12 }
  0x7b   : > { %p489_p7 = por %p488_p6, %p487_p3 }
  0x7d   : > { %p490_p5 = pnand %p489_p7, %p483_p2 }
  0x7f   : > { %493 = shalt.err (!%p490_p5)
}
  0x80   : > { %356 = dma.vmem_to_hbm [thread:$0]  (%p785_p13), %s723_s14, 32, %s728_s24, %s230_s17  }
  0x81 PF: > { %s255_s3 = sand.u32 1, %s524_s9   ;;  %p786_p8 = scmp.ne.s32.totalorder %s778_s22, 0 }
  0x82   : > { %p787_p9 = scmp.ge.s32.totalorder %s536_s12, 2  ;;  %s256_s7 = scalar_lea.sflag [#allocation4], %s255_s3 }
  0x84   : > { %p366_p0 = pnand %p787_p9, %p786_p8 }
  0x86   : > { %519 = dma.done.wait (!%p366_p0), %s256_s7, 32  }
  0x87   : > { %521 = vsyncadd (!%p366_p0), %s256_s7, 4294967264  ;;  %p18_p1 = scmp.ge.s32.totalorder %s582_s15, 4   ;;  %s788_s9 = smov %s528_s10 }
  0x88   : > { %s789_s10 = smov %s532_s11  ;;  %s790_s11 = smov %s594_s18 }
  0x89   : > { %s791_s12 = smov %s582_s15  ;;  %20 = sbr.rel (!%p18_p1) target bundleno = 7 (0x7), region = 86 }
  0x90   :  { %261 = vsyncpa [#allocation3], 1 }
  0x91   :  { %263 = vsyncpa [#allocation3 + $0x1], 1 }
  0x92   :  { %264 = vsyncpa [#allocation6], 1 }
  0x93   :  { %266 = vsyncpa [#allocation6 + $0x1], 1 }
  0x94   :  { %267 = vsyncpa [#allocation4], 1 }
  0x95   :  { %269 = vsyncpa [#allocation4 + $0x1], 1 }

</bundles_post_ra>
